<compile_context>
chip_gen: v7x
topology: tpu7x:2x2x1
jax: 0.10.0
libtpu: 0.0.40
codegen_flags: <defaults>
</compile_context>

<pallas_src>
import functools

import jax
import jax.numpy as jnp
from jax.experimental import pallas as pl
from jax.experimental.pallas import tpu as pltpu

# TODO(synk): the HF tokenizer and pretrained mpnet encoder have no Pallas
# equivalent; the kernel starts from the encoder's last_hidden_state.


def _fused_heads_kernel(emb_ref, w_ref, b_ref, cls_out_ref, ner_out_ref,
                        acc_ref, *, num_ner, inv_seq_len):
    st = pl.program_id(1)

    # One fused MXU matmul for both heads: [tile_s, H] @ [H, N+C].
    x = emb_ref[0]                                            # [tile_s, H]
    logits = jnp.dot(x, w_ref[...],
                     preferred_element_type=jnp.float32)      # [tile_s, N+C] f32
    logits = logits + b_ref[...]                              # + [1, N+C] (broadcast)

    # ---- Task B: NER logits for this tile of tokens (lane-dense columns 0:N) ----
    ner_out_ref[0] = logits[:, :num_ner].astype(ner_out_ref.dtype)

    # ---- Task A: classification.  Accumulate the per-token classifier
    # columns across sequence tiles; divide by S on the last tile.
    @pl.when(st == 0)
    def _():
        acc_ref[...] = jnp.zeros_like(acc_ref)

    acc_ref[...] += jnp.sum(logits[:, num_ner:], axis=0, keepdims=True)

    @pl.when(st == pl.num_programs(1) - 1)
    def _():
        cls_out_ref[0] = (acc_ref[...] * inv_seq_len).astype(cls_out_ref.dtype)


def multitask_heads(token_embeddings, w_cls, b_cls, w_ner, b_ner, *, tile_s=None):
    """token_embeddings: [B, S, H]; weights pre-transposed to [H, out].

    Returns (classification_logits [B, C], ner_logits [B, S, N]).
    """
    B, S, H = token_embeddings.shape
    C = w_cls.shape[-1]
    N = w_ner.shape[-1]

    # Fuse both heads: NER columns first so the large per-token output slice
    # starts at lane 0.  Fuse biases the same way.
    w_fused = jnp.concatenate([w_ner, w_cls], axis=1)                  # [H, N+C]
    b_fused = jnp.concatenate([b_ner.reshape(1, N),
                               b_cls.reshape(1, C)], axis=1)           # [1, N+C]

    # Sequence tile: multiple of 8 sublanes (or the full sequence).  512 rows
    # keeps per-buffer VMEM small enough for v5e/v6e/v7x scoped budgets at
    # H=768 while staying near the HBM roofline.
    if tile_s is None:
        tile_s = min(S, 512)
    if S % tile_s != 0 or (tile_s != S and tile_s % 8 != 0):
        tile_s = S
    num_s_tiles = S // tile_s

    out_dtype = jnp.float32
    itemsize = jnp.dtype(token_embeddings.dtype).itemsize
    cost = pl.CostEstimate(
        flops=2 * B * S * H * (N + C),
        transcendentals=0,
        bytes_accessed=(B * S * H * itemsize
                        + w_fused.size * jnp.dtype(w_fused.dtype).itemsize
                        + b_fused.size * jnp.dtype(b_fused.dtype).itemsize
                        + B * C * 4 + B * S * N * 4),
    )

    kernel = functools.partial(_fused_heads_kernel,
                               num_ner=N, inv_seq_len=1.0 / S)

    cls3, ner = pl.pallas_call(
        kernel,
        out_shape=(
            jax.ShapeDtypeStruct((B, 1, C), out_dtype),
            jax.ShapeDtypeStruct((B, S, N), out_dtype),
        ),
        grid_spec=pltpu.PrefetchScalarGridSpec(
            num_scalar_prefetch=0,
            grid=(B, num_s_tiles),
            in_specs=[
                pl.BlockSpec((1, tile_s, H), lambda b, st: (b, st, 0)),  # embeddings
                pl.BlockSpec((H, N + C), lambda b, st: (0, 0)),          # fused weight
                pl.BlockSpec((1, N + C), lambda b, st: (0, 0)),          # fused bias
            ],
            out_specs=[
                pl.BlockSpec((1, 1, C), lambda b, st: (b, 0, 0)),        # cls (resident over st)
                pl.BlockSpec((1, tile_s, N), lambda b, st: (b, st, 0)),  # ner
            ],
            scratch_shapes=[pltpu.VMEM((1, C), jnp.float32)],
        ),
        compiler_params=pltpu.CompilerParams(
            dimension_semantics=("parallel", "arbitrary")),
        cost_estimate=cost,
    )(token_embeddings, w_fused, b_fused)

    return cls3.reshape(B, C), ner


def init_params(key, hidden_size, num_cls, num_ner):
    """Deterministic nn.Linear-style init (uniform(-1/sqrt(H), 1/sqrt(H)))."""
    k1, k2, k3, k4 = jax.random.split(key, 4)
    bound = 1.0 / jnp.sqrt(hidden_size)
    # PyTorch stores weight as [out, in]; we pass [in, out] to the kernel.
    w_cls = jax.random.uniform(k1, (hidden_size, num_cls), jnp.float32, -bound, bound)
    b_cls = jax.random.uniform(k2, (1, num_cls), jnp.float32, -bound, bound)
    w_ner = jax.random.uniform(k3, (hidden_size, num_ner), jnp.float32, -bound, bound)
    b_ner = jax.random.uniform(k4, (1, num_ner), jnp.float32, -bound, bound)
    return w_cls, b_cls, w_ner, b_ner


if __name__ == "__main__":
    B, S, H = 2, 16, 32          # batch, seq, hidden (small demo shapes)
    NUM_CLS, NUM_NER = 4, 5      # num_classification_labels, num_ner_labels

    key = jax.random.PRNGKey(0)
    k_emb, k_params = jax.random.split(key)

    # Synthetic stand-in for transformer(**inputs).last_hidden_state
    token_embeddings = jax.random.normal(k_emb, (B, S, H), jnp.float32)
    w_cls, b_cls, w_ner, b_ner = init_params(k_params, H, NUM_CLS, NUM_NER)

    # tile_s=8 exercises the grid + pooled-sum accumulator path (2 seq tiles).
    cls_logits, ner_logits = jax.block_until_ready(
        multitask_heads(token_embeddings, w_cls, b_cls, w_ner, b_ner, tile_s=8))

    # Pure-JAX reference check of the forward-pass semantics.
    pooled_ref = jnp.mean(token_embeddings, axis=1)
    cls_ref = pooled_ref @ w_cls + b_cls
    ner_ref = jnp.einsum('bsh,hn->bsn', token_embeddings, w_ner) + b_ner[None, :, :]
    assert cls_logits.shape == (B, NUM_CLS) and ner_logits.shape == (B, S, NUM_NER)
    assert jnp.allclose(cls_logits, cls_ref, atol=1e-4)
    assert jnp.allclose(ner_logits, ner_ref, atol=1e-4)

    print("KERNEL_OK")
</pallas_src>

<mosaic_0001>
module attributes {stable_mosaic.version = 11 : i64} {
  func.func @_fused_heads_kernel(%arg0: i32, %arg1: i32, %arg2: memref<1x8x32xf32, #tpu.memory_space<vmem>>, %arg3: memref<32x9xf32, #tpu.memory_space<vmem>>, %arg4: memref<1x9xf32, #tpu.memory_space<vmem>>, %arg5: memref<1x1x4xf32, #tpu.memory_space<vmem>>, %arg6: memref<1x8x5xf32, #tpu.memory_space<vmem>>, %arg7: memref<1x4xf32, #tpu.memory_space<vmem>>) attributes {dimension_semantics = [#tpu.dimension_semantics<parallel>, #tpu.dimension_semantics<arbitrary>], iteration_bounds = array<i64: 2, 2>, scalar_prefetch = 0 : i64, scratch_operands = 1 : i64, tpu.core_type = #tpu.core_type<tc>, window_params = [{transform_indices = @transform_0, window_bounds = array<i64: 1, 8, 32>}, {pipeline_mode = #tpu.pipeline_mode<synchronous>, transform_indices = @transform_1, window_bounds = array<i64: 32, 9>}, {pipeline_mode = #tpu.pipeline_mode<synchronous>, transform_indices = @transform_2, window_bounds = array<i64: 1, 9>}, {transform_indices = @transform_3, window_bounds = array<i64: 1, 1, 4>}, {transform_indices = @transform_4, window_bounds = array<i64: 1, 8, 5>}]} {
    %c0 = arith.constant 0 : index
    %c0_0 = arith.constant 0 : index
    %c0_1 = arith.constant 0 : index
    %0 = vector.load %arg2[%c0, %c0_0, %c0_1] : memref<1x8x32xf32, #tpu.memory_space<vmem>>, vector<1x8x32xf32>
    %1 = vector.shape_cast %0 : vector<1x8x32xf32> to vector<8x32xf32>
    %c0_2 = arith.constant 0 : index
    %c0_3 = arith.constant 0 : index
    %2 = vector.load %arg3[%c0_2, %c0_3] : memref<32x9xf32, #tpu.memory_space<vmem>>, vector<32x9xf32>
    %cst = arith.constant dense<0.000000e+00> : vector<8x9xf32>
    %3 = tpu.matmul %1, %2, %cst {dimension_numbers = #tpu.dot_dimension_numbers<[1], [0], [0], [1], [0, 0, 1, 1], [], []>} : vector<8x32xf32>, vector<32x9xf32>, vector<8x9xf32> -> vector<8x9xf32>
    %c0_4 = arith.constant 0 : index
    %c0_5 = arith.constant 0 : index
    %4 = vector.load %arg4[%c0_4, %c0_5] : memref<1x9xf32, #tpu.memory_space<vmem>>, vector<1x9xf32>
    %5 = vector.broadcast %4 : vector<1x9xf32> to vector<8x9xf32>
    %6 = arith.addf %3, %5 : vector<8x9xf32>
    %7 = vector.extract_strided_slice %6 {offsets = [0, 0], sizes = [8, 5], strides = [1, 1]} : vector<8x9xf32> to vector<8x5xf32>
    %c0_6 = arith.constant 0 : index
    %c0_7 = arith.constant 0 : index
    %c0_8 = arith.constant 0 : index
    %8 = vector.load %arg6[%c0_6, %c0_7, %c0_8] : memref<1x8x5xf32, #tpu.memory_space<vmem>>, vector<1x8x5xf32>
    %9 = vector.shape_cast %8 : vector<1x8x5xf32> to vector<8x5xf32>
    %10 = vector.shape_cast %7 : vector<8x5xf32> to vector<1x8x5xf32>
    tpu.vector_store %arg6[%c0_6, %c0_7, %c0_8], %10 {strides = array<i32>} : memref<1x8x5xf32, #tpu.memory_space<vmem>>, vector<1x8x5xf32>,
    %c0_i32 = arith.constant 0 : i32
    %11 = arith.cmpi eq, %arg1, %c0_i32 : i32
    %12 = arith.extui %11 : i1 to i32
    %c0_i32_9 = arith.constant 0 : i32
    %13 = arith.cmpi ne, %12, %c0_i32_9 : i32
    scf.if %13 {
      %cst_16 = arith.constant 0.000000e+00 : f32
      %23 = vector.broadcast %cst_16 : f32 to vector<1x4xf32>
      %c0_17 = arith.constant 0 : index
      %c0_18 = arith.constant 0 : index
      %24 = vector.load %arg7[%c0_17, %c0_18] : memref<1x4xf32, #tpu.memory_space<vmem>>, vector<1x4xf32>
      tpu.vector_store %arg7[%c0_17, %c0_18], %23 {strides = array<i32>} : memref<1x4xf32, #tpu.memory_space<vmem>>, vector<1x4xf32>,
    } else {
    }
    %c0_10 = arith.constant 0 : index
    %c0_11 = arith.constant 0 : index
    %14 = vector.load %arg7[%c0_10, %c0_11] : memref<1x4xf32, #tpu.memory_space<vmem>>, vector<1x4xf32>
    %15 = vector.extract_strided_slice %6 {offsets = [0, 5], sizes = [8, 4], strides = [1, 1]} : vector<8x9xf32> to vector<8x4xf32>
    %cst_12 = arith.constant dense<0.000000e+00> : vector<4xf32>
    %16 = vector.multi_reduction <add>, %15, %cst_12 [0] : vector<8x4xf32> to vector<4xf32>
    %17 = vector.shape_cast %16 : vector<4xf32> to vector<1x4xf32>
    %18 = arith.addf %14, %17 : vector<1x4xf32>
    %c0_13 = arith.constant 0 : index
    %c0_14 = arith.constant 0 : index
    %19 = vector.load %arg7[%c0_13, %c0_14] : memref<1x4xf32, #tpu.memory_space<vmem>>, vector<1x4xf32>
    tpu.vector_store %arg7[%c0_13, %c0_14], %18 {strides = array<i32>} : memref<1x4xf32, #tpu.memory_space<vmem>>, vector<1x4xf32>,
    %c1_i32 = arith.constant 1 : i32
    %20 = arith.cmpi eq, %arg1, %c1_i32 : i32
    %21 = arith.extui %20 : i1 to i32
    %c0_i32_15 = arith.constant 0 : i32
    %22 = arith.cmpi ne, %21, %c0_i32_15 : i32
    scf.if %22 {
      %c0_16 = arith.constant 0 : index
      %c0_17 = arith.constant 0 : index
      %23 = vector.load %arg7[%c0_16, %c0_17] : memref<1x4xf32, #tpu.memory_space<vmem>>, vector<1x4xf32>
      %cst_18 = arith.constant 6.250000e-02 : f32
      %24 = vector.broadcast %cst_18 : f32 to vector<1x4xf32>
      %25 = arith.mulf %23, %24 : vector<1x4xf32>
      %c0_19 = arith.constant 0 : index
      %c0_20 = arith.constant 0 : index
      %c0_21 = arith.constant 0 : index
      %26 = vector.load %arg5[%c0_19, %c0_20, %c0_21] : memref<1x1x4xf32, #tpu.memory_space<vmem>>, vector<1x1x4xf32>
      %27 = vector.shape_cast %26 : vector<1x1x4xf32> to vector<1x4xf32>
      %28 = vector.shape_cast %25 : vector<1x4xf32> to vector<1x1x4xf32>
      tpu.vector_store %arg5[%c0_19, %c0_20, %c0_21], %28 {strides = array<i32>} : memref<1x1x4xf32, #tpu.memory_space<vmem>>, vector<1x1x4xf32>,
    } else {
    }
    return
  }
  func.func @transform_0(%arg0: i32, %arg1: i32) -> (i32, i32, i32) {
    %c0_i32 = arith.constant 0 : i32
    %c0_i32_0 = arith.constant 0 : i32
    return %arg0, %arg1, %c0_i32 : i32, i32, i32
  }
  func.func @transform_1(%arg0: i32, %arg1: i32) -> (i32, i32) {
    %c0_i32 = arith.constant 0 : i32
    %c0_i32_0 = arith.constant 0 : i32
    %c0_i32_1 = arith.constant 0 : i32
    return %c0_i32, %c0_i32_0 : i32, i32
  }
  func.func @transform_2(%arg0: i32, %arg1: i32) -> (i32, i32) {
    %c0_i32 = arith.constant 0 : i32
    %c0_i32_0 = arith.constant 0 : i32
    %c0_i32_1 = arith.constant 0 : i32
    return %c0_i32, %c0_i32_0 : i32, i32
  }
  func.func @transform_3(%arg0: i32, %arg1: i32) -> (i32, i32, i32) {
    %c0_i32 = arith.constant 0 : i32
    %c0_i32_0 = arith.constant 0 : i32
    %c0_i32_1 = arith.constant 0 : i32
    return %arg0, %c0_i32, %c0_i32_0 : i32, i32, i32
  }
  func.func @transform_4(%arg0: i32, %arg1: i32) -> (i32, i32, i32) {
    %c0_i32 = arith.constant 0 : i32
    %c0_i32_0 = arith.constant 0 : i32
    return %arg0, %arg1, %c0_i32 : i32, i32, i32
  }
}

</mosaic_0001>

<bundles_post_ra>
// kernel: tpu_custom_call.1
= control target key start
LH: loop header
LB: loop body
LE: loop exit
PB: predicated region body
PF: predicated region fallthrough
CT: control target
= control target key end

     0   :  { %10 = vsyncpa [#allocation4], 0  ;;  %s901_s0 = inlined_call_operand.vmem [shape: f32[2,16,32], index: 0, kind: input, shape index: {}]   ;;  %s902_s1 = inlined_call_operand.vmem [shape: f32[32,9], index: 1, kind: input, shape index: {}]   ;;  %s903_s2 = inlined_call_operand.vmem [shape: f32[1,9], index: 2, kind: input, shape index: {}]   ;;  %s904_s3 = inlined_call_operand.hbm [shape: f32[2,1,4], index: 3, kind: output, shape index: {0}]   ;;  %s905_s4 = inlined_call_operand.vmem [shape: f32[2,16,5], index: 4, kind: output, shape index: {1}]  }
   0x1   :  { %12 = vsyncpa [#allocation4 + $0x1], 0  ;;  %s745_s15 = smov 0   ;;  %s747_s16 = smov 0  }
   0x2   :  { %s749_s17 = smov 0   ;;  %s751_s18 = smov 0  }
   0x3   :  { %s753_s19 = smov 0   ;;  %s755_s20 = smov 0  }
   0x4   :  { %s757_s21 = smov 0   ;;  %s759_s22 = smov 0  }
   0x5 LB: > { %s502_s23 = sadd.s32 4294967295, %s711_s22   ;;  %s503_s24 = sadd.s32 4294967294, %s711_s22   ;;  %s711_s22 = sphi %s759_s22, %s18_s22   ;;  %s707_s21 = sphi %s757_s21, %s916_s21   ;;  %s703_s20 = sphi %s755_s20, %s915_s20   ;;  %s699_s19 = sphi %s753_s19, %s914_s19   ;;  %s695_s18 = sphi %s751_s18, %s913_s18   ;;  %s691_s17 = sphi %s749_s17, %s912_s17   ;;  %s687_s16 = sphi %s747_s16, %s911_s16   ;;  %s683_s15 = sphi %s745_s15, %s910_s15  }
   0x6   : > { %s27_s25 = sadd.s32 1, %s703_s20  ;;  %s30_s26 = sadd.s32 1, %s707_s21 }
   0x7   : > { %p28_p0 = scmp.ge.s32.totalorder %s27_s25, 2  ;;  %p117_p1 = scmp.ne.s32.totalorder %s691_s17, %s687_s16 }
   0x8   : > { %p118_p2 = scmp.eq.s32.totalorder %s502_s23, 3  ;;  %p123_p4 = scmp.ne.s32.totalorder %s687_s16, %s683_s15 }
   0x9   : > { %s918_s25 = smov (%p28_p0, %s27_s25), 0  ;;  %s920_s26 = smov (!%p28_p0, %s30_s26), %s707_s21 }
   0xa   : > { %p794_p3 = por %p118_p2, %p117_p1  ;;  %p32_p5 = scmp.ge.s32.totalorder %s920_s26, 2 }
   0xb   : > { %p124_p6 = scmp.eq.s32.totalorder %s503_s24, 3  ;;  %p506_p7 = scmp.ge.s32.totalorder %s711_s22, 1 }
   0xc   : > { %p187_p8 = scmp.lt.s32.totalorder %s711_s22, 5  ;;  %s922_s26 = smov (%p32_p5, %s920_s26), 0 }
   0xd   : > { %p804_p9 = por %p124_p6, %p123_p4  ;;  %s104_s29 = ssub.s32 %s707_s21, %s922_s26 }
   0xe   : > { %p188_p10 = pnand %p506_p7, %p187_p8  ;;  %s107_s30 = sadd.s32 1, %s691_s17 }
   0xf   : > { %p105_p11 = scmp.eq.s32.totalorder %s104_s29, 0  ;;  %v240_v0 = vld [vmem:[%s902_s1] sm:$0xff] (!%p188_p10)  ;;  %v241_v1 = vld [vmem:[%s902_s1 + $0x8] sm:$0xff] (!%p188_p10)  ;;  %v242_v2 = vld [vmem:[%s902_s1 + $0x10] sm:$0xff] (!%p188_p10)  ;;  %v713_v3 = vmov (!%p188_p10), 0.0|0.0   ;;  %p223_p12 = scmp.lt.s32.totalorder (!%p188_p10), %s699_s19, 1 }
  0x10   : > { %191 = sbr.rel (%p188_p10) target bundleno = 416 (0x1a0), region = 32  ;;  %534 = vmatprep.subr.bf16.mxu0 (!%p188_p10), %v713_v3  ;;  %v535_v4 = vpack.c.bf16 (!%p188_p10), %v241_v1, %v240_v0  ;;  %v243_v5 = vld [vmem:[%s902_s1 + $0x18] sm:$0xff] (!%p188_p10)  ;;  %vm714_vm0 = vmmov (!%p188_p10), 0   ;;  %v715_v6 = vmov (!%p188_p10), 0.0   ;;  %p225_p13 = scmp.lt.s32.totalorder (!%p188_p10), %s695_s18, 1  ;;  %vm251_vm1 = vcmask (!%p188_p10), 261120  }
  0x11   : > { %s812_s5 = scalar_select %p105_p11, %s691_s17, %s107_s30  }
  0x12   : > { %531 = vmatprep.mubr.msk.f32.mxu0 (!%p188_p10), %vm714_vm0, %v715_v6  ;;  %536 = vmatpush3.bf16.msra.mxu0 (!%p188_p10), %v535_v4  ;;  %v538_v7 = vpack.c.bf16 (!%p188_p10), %v243_v5, %v242_v2  ;;  %v511_v9 = vld [vmem:[%s903_s2] ss:$0 sm:$0xff] (!%p188_p10)  ;;  %vm325_vm2 = vcmask (!%p188_p10), 39936   ;;  %p513_p0 = scmp.ne.s32.totalorder (!%p188_p10), %s695_s18, 0 }
  0x13   : > { %537 = vmatprep.subr.bf16.mxu0 (!%p188_p10), %v713_v3 }
  0x16   : > { %539 = vmatpush3.bf16.msra.mxu0 (!%p188_p10), %v538_v7 }
  0x17   : > { %s224_s23 = scalar_select %p223_p12, %s699_s19, 1 }
  0x18   : > { %s226_s24 = scalar_select %p225_p13, %s695_s18, 1 }
  0x19   : > { %s507_s29 = sshll.u32 %s224_s23, 1  ;;  %s908_s23 = sand.u32 1, %s687_s16   ;;  %vm331_vm3 = vcmask (!%p513_p0), 24576   ;;  %v716_v13 = vmov (!%p513_p0), 0.0  }
  0x1a   : > { %s228_s30 = sadd.s32 %s507_s29, %s226_s24  ;;  %s842_s24 = scalar_lea.vmem [#allocation3], %s908_s23  ;;  %332 = vst.msk [vmem:[#allocation2] sm:$0x1] (!%p513_p0), %vm331_vm3, %v716_v13 }
  0x1b   : > { %s508_s7 = sshll.u32 %s228_s30, 3 }
  0x1c   : > { %s230_s10 = scalar_lea.vmem %s901_s0, %s508_s7  ;;  %s238_s6 = scalar_lea.vmem %s905_s4, %s508_s7 }
  0x1d   : > { %v239_v8 = vld [vmem:[%s230_s10] sm:$0xff] }
  0x1e   : > { %532 = vmatmul.mubr.msk.f32.vlgmr.msra.gmra.mrb[0].mxu0 %vm251_vm1, %v239_v8 }
  0xee   : > { %330 = sbr.rel (%p513_p0) target bundleno = 245 (0xf5), region = 36 }
  0xf1   : > { %v321_v10 = vpop.f32.mrb[0].mxu0 }
  0xf2   : > { %v322_v11 = vadd.f32 %v511_v9, %v321_v10  ;;  %v533_v12 = vpop.f32.mrb[1].mxu0 }
  0xf4   : > { %326 = vst.msk [vmem:[%s238_s6] sm:$0xff] %vm325_vm2, %v322_v11 }
  0xf5 PF: > { %vm334_vm4 = vcmask 72744   ;;  %v717_v16 = vmov 1966171168   ;;  %v346_v18 = vlaneseq  ;;  %s718_s6 = smov 123   ;;  %v333_v29 = vld [vmem:[#allocation2] sm:$0x1] }
  0xf6   : > { %v335_v14 = vsel %vm334_vm4, %v322_v11, 0.0  ;;  %v344_v17 = vunpack.c.l.s4 %v717_v16  ;;  %vm361_vm5 = vcmask 24576   ;;  %p514_p1 = scmp.ne.s32.totalorder %s695_s18, 1 }
  0xf7   : > { %v336_v15 = vrot.slane %v335_v14, 4  ;;  %v347_v22 = vshrl.u32 %v346_v18, 7 }
  0xf8   : > { %v345_v21 = vunpack.c.0.s8 %v344_v17 }
  0xf9   : > { %v337_v19 = vadd.f32 %v336_v15, %v335_v14 }
  0xfa   : > { %v348_v25 = vsub.s32 %v345_v21, %v347_v22 }
  0xfb   : > { %v338_v20 = vrot.slane %v337_v19, 2 }
  0xfd   : > { %v339_v23 = vadd.f32 %v338_v20, %v337_v19 }
  0xff   : > { %v340_v24 = vrot.slane %v339_v23, 1 }
 0x101   : > { %v341_v26 = vadd.f32 %v340_v24, %v339_v23 }
 0x103   : > { %v349_v27 = vrot.slane %v341_v26, %v348_v25 }
 0x105   : > { %v356_v28 = vrot.slane %v349_v27, %v348_v25 }
 0x107   : > { %357 = vrot.lane.b32.xlu0 %v356_v28, %s718_s6 }
 0x176   : > { %366 = sbr.rel (%p514_p1) target bundleno = 391 (0x187), region = 40 }
 0x179   : > { %v358_v30 = vpop.permute.xlu0 %357 }
 0x17a   : > { %v360_v31 = vadd.f32 %v358_v30, %v333_v29 }
 0x17c   : > { %362 = vst.msk [vmem:[#allocation2] sm:$0x1] %vm361_vm5, %v360_v31 }
 0x183   : > { %v367_v32 = vld [vmem:[#allocation2] sm:$0x1] }
 0x184   : > { %v368_v33 = vmul.f32 0.0625, %v367_v32 }
 0x186   : > { %369 = vst.msk [vmem:[%s842_s24] sm:$0x1] %vm361_vm5, %v368_v33 }
 0x187 PF: > { %s515_s29 = sshll.u32 %s699_s19, 4  ;;  %s391_s9 = sshll.u32 %s842_s24, 4  ;;  %s392_s9 = int_to_ptr.vmem [resolvable:$true] %s391_s9 }
 0x188   : > { %s851_s8 = scalar_lea.hbm %s904_s3, %s515_s29  ;;  %s909_s10 = sand.u32 1, %s687_s16  }
 0x189   : > { %s371_s18 = scalar_lea.sflag [#allocation4], %s909_s10  ;;  %s617_s11 = scalar_lea.vmem %s392_s9, 16 }
 0x18a   : > { %p618_p2 = scmp.ne.s32.totalorder %s392_s9, %s617_s11  ;;  %s719_s12 = smov [#allocation3]  }
 0x18b   : > { %s621_s13 = sshll.u32 %s719_s12, 4  ;;  %s622_s13 = int_to_ptr.vmem [resolvable:$false] %s621_s13 }
 0x18c   : > { %p619_p4 = pnand %p618_p2, %p794_p3  ;;  %s623_s14 = scalar_lea.vmem %s622_s13, 32 }
 0x18d   : > { %p624_p6 = scmp.lt.s32.totalorder %s392_s9, %s622_s13  ;;  %p625_p7 = scmp.lt.s32.totalorder %s623_s14, %s617_s11 }
 0x18e   : > { %p620_p5 = pneg %p619_p4 }
 0x18f   : > { %p626_p8 = por %p625_p7, %p624_p6 }
 0x191   : > { %p627_p10 = pnand %p626_p8, %p620_p5 }
 0x193   : > { %630 = shalt.err (!%p627_p10)
}
 0x194   : > { %s631_s19 = scalar_lea.hbm %s851_s8, 16  ;;  %s635_s6 = scalar_lea.hbm %s904_s3, 32 }
 0x195   : > { %p632_p11 = scmp.ne.s32.totalorder %s851_s8, %s631_s19  ;;  %p636_p0 = scmp.lt.u32.totalorder %s851_s8, %s904_s3 }
 0x196   : > { %p637_p1 = scmp.lt.u32.totalorder %s635_s6, %s631_s19  ;;  %p639_p4 = scmp.lt.u32.totalorder %s631_s19, %s851_s8 }
 0x197   : > { %p633_p12 = pnand %p632_p11, %p794_p3 }
 0x198   : > { %p638_p2 = por %p637_p1, %p636_p0 }
 0x199   : > { %p634_p13 = pneg %p633_p12 }
 0x19a   : > { %p640_p5 = por %p639_p4, %p638_p2 }
 0x19c   : > { %p641_p6 = pnand %p640_p5, %p634_p13 }
 0x19e   : > { %644 = shalt.err (!%p641_p6)
}
 0x19f   : > { %540 = dma.vmem_to_hbm [thread:$0]  (%p794_p3), %s392_s9, 16, %s851_s8, %s371_s18  }
 0x1a0 PF: > { %p546_p7 = scmp.ge.s32.totalorder %s711_s22, 2  ;;  %s406_s7 = sand.u32 1, %s683_s15  }
 0x1a1   : > { %s407_s10 = scalar_lea.sflag [#allocation4], %s406_s7 }
 0x1a2   : > { %p543_p8 = pnand %p546_p7, %p804_p9 }
 0x1a4   : > { %678 = dma.done.wait (!%p543_p8), %s407_s10, 16  }
 0x1a5   : > { %680 = vsyncadd (!%p543_p8), %s407_s10, 4294967280  ;;  %s18_s22 = sadd.s32 1, %s711_s22   ;;  %s910_s15 = smov %s687_s16 }
 0x1a6   : > { %p15_p10 = scmp.ge.s32.totalorder %s18_s22, 6   ;;  %s911_s16 = smov %s691_s17 }
 0x1a7   : > { %s912_s17 = smov %s812_s5  ;;  %s913_s18 = smov %s703_s20 }
 0x1a8   : > { %s914_s19 = smov %s707_s21  ;;  %s915_s20 = smov %s918_s25 }
 0x1a9   : > { %s916_s21 = smov %s922_s26  ;;  %17 = sbr.rel (!%p15_p10) target bundleno = 5 (0x5), region = 87 }
 0x1b0   :  { %422 = vsyncpa [#allocation4], 1 }
 0x1b1   :  { %424 = vsyncpa [#allocation4 + $0x1], 1 }

</bundles_post_ra>
